<compile_context>
chip_gen: v7x
topology: tpu7x:2x2x1
jax: 0.10.0
libtpu: 0.0.40
codegen_flags: <defaults>
</compile_context>

<pallas_src>
import functools

import jax
import jax.numpy as jnp
from jax.experimental import pallas as pl
from jax.experimental.pallas import tpu as pltpu

_LANE = 128        # lane width: pad batch to a multiple of this
_MAX_TILE = 2048   # lanes per grid step for large batches


def _dpo_kernel(x_ref, loss_ref, rw_ref, *,
                beta, label_smoothing, ipo, batch, tile, inv_batch):
    i = pl.program_id(0)

    x = x_ref[...].astype(jnp.float32)   # (4, tile) packed log-probs
    pc = x[0:1, :]                       # policy  chosen
    pr = x[1:2, :]                       # policy  rejected
    rc = x[2:3, :]                       # reference chosen
    rr = x[3:4, :]                       # reference rejected

    logits = (pc - pr) - (rc - rr)

    if ipo:
        losses = (logits - 1.0 / (2.0 * beta)) ** 2
    else:
        # -logsigmoid(z)*(1-s) - logsigmoid(-z)*s  ==  -logsigmoid(z) + s*z
        # (logsigmoid(-z) = logsigmoid(z) - z) -> single exp/log1p per element.
        z = beta * logits
        losses = (jnp.log1p(jnp.exp(-jnp.abs(z)))
                  - jnp.minimum(z, 0.0)
                  + label_smoothing * z)

    # Mask padded lanes out of the reduction; fold the mean into a constant
    # multiply by 1/true_batch (no divide / extra EUP work).
    lane = i * tile + jax.lax.broadcasted_iota(jnp.int32, (1, tile), 1)
    losses = jnp.where(lane < batch, losses, 0.0)

    @pl.when(i == 0)
    def _():
        loss_ref[0] = jnp.float32(0.0)

    loss_ref[0] += jnp.sum(losses) * inv_batch

    # Packed rewards, emitted directly in the output dtype.
    rw_ref[0:1, :] = (beta * (pc - rc)).astype(rw_ref.dtype)
    rw_ref[1:2, :] = (beta * (pr - rr)).astype(rw_ref.dtype)


def dpo_loss(policy_chosen_logps,
             policy_rejected_logps,
             reference_chosen_logps,
             reference_rejected_logps,
             *, beta, label_smoothing=0.0, ipo=False):
    (b,) = policy_chosen_logps.shape
    in_dtype = policy_chosen_logps.dtype

    # Pad batch to a lane-dense size; tile it for large batches.
    padded_b = max(_LANE, -(-b // _LANE) * _LANE)
    if padded_b > _MAX_TILE:
        padded_b = -(-padded_b // _MAX_TILE) * _MAX_TILE
        tile = _MAX_TILE
    else:
        tile = padded_b
    num_tiles = padded_b // tile

    # One packed, lane-dense input slab: (4, padded_b).
    packed = jnp.stack((policy_chosen_logps,
                        policy_rejected_logps,
                        reference_chosen_logps,
                        reference_rejected_logps), axis=0)
    packed = jnp.pad(packed, ((0, 0), (0, padded_b - b)))

    kernel = functools.partial(_dpo_kernel,
                               beta=float(beta),
                               label_smoothing=float(label_smoothing),
                               ipo=bool(ipo),
                               batch=b,
                               tile=tile,
                               inv_batch=1.0 / b)

    loss, rewards = pl.pallas_call(
        kernel,
        out_shape=(
            jax.ShapeDtypeStruct((1,), jnp.float32),         # mean loss (SMEM)
            jax.ShapeDtypeStruct((2, padded_b), in_dtype),   # packed rewards
        ),
        grid=(num_tiles,),
        in_specs=[pl.BlockSpec((4, tile), lambda i: (0, i))],
        out_specs=(
            pl.BlockSpec(memory_space=pltpu.MemorySpace.SMEM),
            pl.BlockSpec((2, tile), lambda i: (0, i)),
        ),
        compiler_params=pltpu.CompilerParams(
            dimension_semantics=("arbitrary",)),   # loss accumulates over tiles
    )(packed)

    chosen_rewards = rewards[0, :b]
    rejected_rewards = rewards[1, :b]
    return loss.reshape(()), chosen_rewards, rejected_rewards


def _dpo_ref(pc, pr, rc, rr, *, beta, label_smoothing=0.0, ipo=False):
    pc, pr, rc, rr = (x.astype(jnp.float32) for x in (pc, pr, rc, rr))
    logits = (pc - pr) - (rc - rr)
    if ipo:
        losses = (logits - 1.0 / (2.0 * beta)) ** 2
    else:
        losses = (-jax.nn.log_sigmoid(beta * logits) * (1.0 - label_smoothing)
                  - jax.nn.log_sigmoid(-beta * logits) * label_smoothing)
    return losses.mean(), beta * (pc - rc), beta * (pr - rr)


if __name__ == "__main__":
    key = jax.random.PRNGKey(0)
    beta, label_smoothing = 0.1, 0.05

    # --- small batch (single grid step) ---
    B = 8
    k1, k2, k3, k4 = jax.random.split(key, 4)
    policy_chosen = -jax.random.uniform(k1, (B,), jnp.float32, 0.5, 5.0)
    policy_rejected = -jax.random.uniform(k2, (B,), jnp.float32, 0.5, 5.0)
    ref_chosen = -jax.random.uniform(k3, (B,), jnp.float32, 0.5, 5.0)
    ref_rejected = -jax.random.uniform(k4, (B,), jnp.float32, 0.5, 5.0)

    loss, cr, rr = dpo_loss(policy_chosen, policy_rejected,
                            ref_chosen, ref_rejected,
                            beta=beta, label_smoothing=label_smoothing, ipo=False)
    jax.block_until_ready((loss, cr, rr))

    rl, rcr, rrr = _dpo_ref(policy_chosen, policy_rejected,
                            ref_chosen, ref_rejected,
                            beta=beta, label_smoothing=label_smoothing, ipo=False)
    assert jnp.allclose(loss, rl, atol=1e-5, rtol=1e-5)
    assert jnp.allclose(cr, rcr, atol=1e-5, rtol=1e-5)
    assert jnp.allclose(rr, rrr, atol=1e-5, rtol=1e-5)

    # --- IPO branch ---
    loss_ipo, _, _ = dpo_loss(policy_chosen, policy_rejected,
                              ref_chosen, ref_rejected, beta=beta, ipo=True)
    rl_ipo, _, _ = _dpo_ref(policy_chosen, policy_rejected,
                            ref_chosen, ref_rejected, beta=beta, ipo=True)
    jax.block_until_ready(loss_ipo)
    assert jnp.allclose(loss_ipo, rl_ipo, atol=1e-5, rtol=1e-5)

    # --- larger batch: exercises padding mask + multi-tile accumulation ---
    B2 = 2500
    j1, j2, j3, j4 = jax.random.split(jax.random.PRNGKey(1), 4)
    pc2 = -jax.random.uniform(j1, (B2,), jnp.float32, 0.5, 5.0)
    pr2 = -jax.random.uniform(j2, (B2,), jnp.float32, 0.5, 5.0)
    rc2 = -jax.random.uniform(j3, (B2,), jnp.float32, 0.5, 5.0)
    rr2 = -jax.random.uniform(j4, (B2,), jnp.float32, 0.5, 5.0)
    loss2, cr2, rr2_out = dpo_loss(pc2, pr2, rc2, rr2,
                                   beta=beta, label_smoothing=label_smoothing)
    jax.block_until_ready((loss2, cr2, rr2_out))
    rl2, rcr2, rrr2 = _dpo_ref(pc2, pr2, rc2, rr2,
                               beta=beta, label_smoothing=label_smoothing)
    assert jnp.allclose(loss2, rl2, atol=1e-4, rtol=1e-4)
    assert jnp.allclose(cr2, rcr2, atol=1e-5, rtol=1e-5)
    assert jnp.allclose(rr2_out, rrr2, atol=1e-5, rtol=1e-5)

    print("KERNEL_OK")
</pallas_src>

<mosaic_0001>
module attributes {stable_mosaic.version = 11 : i64} {
  func.func @_dpo_kernel(%arg0: i32, %arg1: memref<4x128xf32, #tpu.memory_space<vmem>>, %arg2: memref<1xf32, #tpu.memory_space<smem>>, %arg3: memref<2x128xf32, #tpu.memory_space<vmem>>) attributes {dimension_semantics = [#tpu.dimension_semantics<arbitrary>], iteration_bounds = array<i64: 1>, scalar_prefetch = 0 : i64, scratch_operands = 0 : i64, tpu.core_type = #tpu.core_type<tc>, window_params = [{transform_indices = @transform_0, window_bounds = array<i64: 4, 128>}, {transform_indices = @transform_1, window_bounds = array<i64: 1>}, {transform_indices = @transform_2, window_bounds = array<i64: 2, 128>}]} {
    %c0 = arith.constant 0 : index
    %c0_0 = arith.constant 0 : index
    %0 = vector.load %arg1[%c0, %c0_0] : memref<4x128xf32, #tpu.memory_space<vmem>>, vector<4x128xf32>
    %1 = vector.extract_strided_slice %0 {offsets = [0, 0], sizes = [1, 128], strides = [1, 1]} : vector<4x128xf32> to vector<1x128xf32>
    %2 = vector.extract_strided_slice %0 {offsets = [1, 0], sizes = [1, 128], strides = [1, 1]} : vector<4x128xf32> to vector<1x128xf32>
    %3 = vector.extract_strided_slice %0 {offsets = [2, 0], sizes = [1, 128], strides = [1, 1]} : vector<4x128xf32> to vector<1x128xf32>
    %4 = vector.extract_strided_slice %0 {offsets = [3, 0], sizes = [1, 128], strides = [1, 1]} : vector<4x128xf32> to vector<1x128xf32>
    %5 = arith.subf %1, %2 : vector<1x128xf32>
    %6 = arith.subf %3, %4 : vector<1x128xf32>
    %7 = arith.subf %5, %6 : vector<1x128xf32>
    %cst = arith.constant 1.000000e-01 : f32
    %8 = vector.broadcast %cst : f32 to vector<1x128xf32>
    %9 = arith.mulf %8, %7 : vector<1x128xf32>
    %10 = math.absf %9 : vector<1x128xf32>
    %cst_1 = arith.constant 0.000000e+00 : f32
    %11 = vector.broadcast %cst_1 : f32 to vector<1x128xf32>
    %12 = arith.subf %11, %10 : vector<1x128xf32>
    %13 = math.exp %12 : vector<1x128xf32>
    %14 = math.log1p %13 : vector<1x128xf32>
    %cst_2 = arith.constant 0.000000e+00 : f32
    %15 = vector.broadcast %cst_2 : f32 to vector<1x128xf32>
    %16 = arith.minimumf %9, %15 : vector<1x128xf32>
    %17 = arith.subf %14, %16 : vector<1x128xf32>
    %cst_3 = arith.constant 5.000000e-02 : f32
    %18 = vector.broadcast %cst_3 : f32 to vector<1x128xf32>
    %19 = arith.mulf %18, %9 : vector<1x128xf32>
    %20 = arith.addf %17, %19 : vector<1x128xf32>
    %c128_i32 = arith.constant 128 : i32
    %21 = arith.muli %arg0, %c128_i32 : i32
    %22 = tpu.iota {dimensions = array<i32: 1>} : vector<1x128xi32>
    %23 = vector.broadcast %21 : i32 to vector<1x128xi32>
    %24 = arith.addi %23, %22 : vector<1x128xi32>
    %c8_i32 = arith.constant 8 : i32
    %25 = vector.broadcast %c8_i32 : i32 to vector<1x128xi32>
    %26 = arith.cmpi slt, %24, %25 : vector<1x128xi32>
    %cst_4 = arith.constant 0.000000e+00 : f32
    %27 = vector.broadcast %cst_4 : f32 to vector<1x128xf32>
    %28 = arith.select %26, %20, %27 : vector<1x128xi1>, vector<1x128xf32>
    %c0_i32 = arith.constant 0 : i32
    %29 = arith.cmpi eq, %arg0, %c0_i32 : i32
    %30 = arith.extui %29 : i1 to i32
    %c0_i32_5 = arith.constant 0 : i32
    %31 = arith.cmpi ne, %30, %c0_i32_5 : i32
    scf.if %31 {
      %cst_15 = arith.constant 0.000000e+00 : f32
      %c0_16 = arith.constant 0 : index
      %48 = memref.load %arg2[%c0_16] : memref<1xf32, #tpu.memory_space<smem>>
      memref.store %cst_15, %arg2[%c0_16] : memref<1xf32, #tpu.memory_space<smem>>
    } else {
    }
    %c0_6 = arith.constant 0 : index
    %32 = memref.load %arg2[%c0_6] : memref<1xf32, #tpu.memory_space<smem>>
    %33 = vector.shape_cast %28 : vector<1x128xf32> to vector<1x1x128xf32>
    %cst_7 = arith.constant dense<0.000000e+00> : vector<1xf32>
    %34 = vector.multi_reduction <add>, %33, %cst_7 [1, 2] : vector<1x1x128xf32> to vector<1xf32>
    %35 = vector.shape_cast %34 : vector<1xf32> to vector<1x1x1xf32>
    %36 = vector.extract %35[0, 0, 0] : f32 from vector<1x1x1xf32>
    %cst_8 = arith.constant 1.250000e-01 : f32
    %37 = arith.mulf %36, %cst_8 : f32
    %38 = arith.addf %32, %37 : f32
    %c0_9 = arith.constant 0 : index
    %39 = memref.load %arg2[%c0_9] : memref<1xf32, #tpu.memory_space<smem>>
    memref.store %38, %arg2[%c0_9] : memref<1xf32, #tpu.memory_space<smem>>
    %40 = arith.subf %1, %3 : vector<1x128xf32>
    %cst_10 = arith.constant 1.000000e-01 : f32
    %41 = vector.broadcast %cst_10 : f32 to vector<1x128xf32>
    %42 = arith.mulf %41, %40 : vector<1x128xf32>
    %c0_11 = arith.constant 0 : index
    %c0_12 = arith.constant 0 : index
    %43 = vector.load %arg3[%c0_11, %c0_12] : memref<2x128xf32, #tpu.memory_space<vmem>>, vector<1x128xf32>
    tpu.vector_store %arg3[%c0_11, %c0_12], %42 {strides = array<i32>} : memref<2x128xf32, #tpu.memory_space<vmem>>, vector<1x128xf32>,
    %44 = arith.subf %2, %4 : vector<1x128xf32>
    %cst_13 = arith.constant 1.000000e-01 : f32
    %45 = vector.broadcast %cst_13 : f32 to vector<1x128xf32>
    %46 = arith.mulf %45, %44 : vector<1x128xf32>
    %c1 = arith.constant 1 : index
    %c0_14 = arith.constant 0 : index
    %47 = vector.load %arg3[%c1, %c0_14] : memref<2x128xf32, #tpu.memory_space<vmem>>, vector<1x128xf32>
    tpu.vector_store %arg3[%c1, %c0_14], %46 {strides = array<i32>} : memref<2x128xf32, #tpu.memory_space<vmem>>, vector<1x128xf32>,
    return
  }
  func.func @transform_0(%arg0: i32) -> (i32, i32) {
    %c0_i32 = arith.constant 0 : i32
    %c0_i32_0 = arith.constant 0 : i32
    return %c0_i32, %arg0 : i32, i32
  }
  func.func @transform_1(%arg0: i32) -> i32 {
    %c0_i32 = arith.constant 0 : i32
    %c0_i32_0 = arith.constant 0 : i32
    return %c0_i32 : i32
  }
  func.func @transform_2(%arg0: i32) -> (i32, i32) {
    %c0_i32 = arith.constant 0 : i32
    %c0_i32_0 = arith.constant 0 : i32
    return %c0_i32, %arg0 : i32, i32
  }
}

</mosaic_0001>

<bundles_post_ra>
// kernel: tpu_custom_call.1
= control target key start
LH: loop header
LB: loop body
LE: loop exit
PB: predicated region body
PF: predicated region fallthrough
CT: control target
= control target key end

     0   :  { %8 = vsyncpa [#allocation3], 0  ;;  %s238_s0 = inlined_call_operand.hbm [shape: f32[4,128], index: 0, kind: input, shape index: {}]   ;;  %s239_s1 = inlined_call_operand.hbm [shape: f32[1], index: 1, kind: output, shape index: {0}]   ;;  %s240_s2 = inlined_call_operand.hbm [shape: f32[2,128], index: 2, kind: output, shape index: {1}]  }
   0x1   :  { %9 = vsyncpa [#allocation5], 0 }
   0x2   :  { %10 = vsyncpa [#allocation4], 0  ;;  %s184_s9 = smov [#allocation2]   ;;  %s124_s13 = scalar_lea.hbm %s238_s0, 64 }
   0x3   :  { %s17_s10 = sshll.u32 %s184_s9, 4  ;;  %p125_p0 = scmp.ne.s32.totalorder %s238_s0, %s124_s13  ;;  %s18_s10 = int_to_ptr.vmem [resolvable:$true] %s17_s10 }
   0x4   :  { %p128_p1 = scmp.lt.u32.totalorder %s124_s13, %s238_s0 }
   0x6   :  { %p130_p2 = pnand %p128_p1, %p125_p0 }
   0x8   :  { %133 = shalt.err (!%p130_p2)
}
   0x9   :  { %s134_s18 = scalar_lea.vmem %s18_s10, 64  ;;  %p139_p4 = scmp.lt.s32.totalorder %s18_s10, %s18_s10 }
   0xa   :  { %p135_p3 = scmp.ne.s32.totalorder %s18_s10, %s134_s18  ;;  %p140_p5 = scmp.lt.s32.totalorder %s134_s18, %s134_s18 }
   0xc   :  { %p141_p6 = por %p140_p5, %p139_p4 }
   0xe   :  { %p142_p7 = pnand %p141_p6, %p135_p3 }
  0x10   :  { %145 = shalt.err (!%p142_p7)
}
  0x11   :  { %20 = dma.hbm_to_vmem [thread:$0]  %s238_s0, 64, %s18_s10, [#allocation3]  }
  0x12   :  { %178 = dma.done.wait [#allocation3], 64  }
  0x13   :  { %179 = vsyncadd [#allocation3], 4294967232  ;;  %v24_v0 = vld [vmem:[#allocation2] sm:$0xf]  ;;  %v52_v14 = vlaneseq  ;;  %vm65_vm2 = vcmask 1040384   ;;  %s185_s0 = smov [#allocation7]  }
  0x14   :  { %v26_v1 = vrot.slane %v24_v0, 1  ;;  %v80_v26 = vrot.slane %v24_v0, 2  ;;  %s100_s21 = sshll.u32 %s185_s0, 4  ;;  %s101_s21 = int_to_ptr.vmem [resolvable:$true] %s100_s21 }
  0x15   :  { %v53_v19 = vand.u32 127, %v52_v14  ;;  %s146_s22 = scalar_lea.vmem %s101_s21, 32  ;;  %p151_p9 = scmp.lt.s32.totalorder %s101_s21, %s101_s21 }
  0x16   :  { %v28_v2 = vsub.f32 %v24_v0, %v26_v1  ;;  %v82_v27 = vsub.f32 %v24_v0, %v80_v26  ;;  %p147_p8 = scmp.ne.s32.totalorder %s101_s21, %s146_s22  ;;  %p152_p10 = scmp.lt.s32.totalorder %s146_s22, %s146_s22 }
  0x17   :  { %vm56_vm1 = vcmp.lt.s32.totalorder %v53_v19, 8 }
  0x18   :  { %v30_v3 = vrot.slane %v28_v2, 2  ;;  %v83_v28 = vmul.f32 0.1, %v82_v27  ;;  %p153_p11 = por %p152_p10, %p151_p9 }
  0x1a   :  { %v32_v4 = vsub.f32 %v28_v2, %v30_v3  ;;  %84 = vst [vmem:[#allocation7] sm:$0x3] %v83_v28   ;;  %p154_p12 = pnand %p153_p11, %p147_p8 }
  0x1c   :  { %v33_v5 = vmul.f32 0.1, %v32_v4 }
  0x1e   :  { %v34_v6 = vand.u32 2147483647, %v33_v5  ;;  %v47_v17 = vmin.f32 %v33_v5, 0.0  ;;  %v49_v20 = vmul.f32 0.05, %v33_v5 }
  0x20   :  { %v35_v7 = vsub.f32 0.0, %v34_v6 }
  0x22   :  { %v36_v8 = vmul.f32 1.442695, %v35_v7 }
  0x24   :  { %120 = vpow2.f32 %v36_v8 }
  0x2e   :  { %v121_v9 = vpop.eup %120 }
  0x2f   :  { %v38_v10 = vadd.f32 1.0, %v121_v9  ;;  %v41_v11 = vmul.f32 -0.5, %v121_v9  ;;  %v44_v13 = vand.u32 2147483647, %v121_v9 }
  0x31   :  { %122 = vlog2.f32 %v38_v10  ;;  %v42_v12 = vadd.f32 1.0, %v41_v11  ;;  %vm45_vm0 = vcmp.lt.f32.partialorder %v44_v13, 0.0004427343 }
  0x33   :  { %v43_v15 = vmul.f32 %v121_v9, %v42_v12 }
  0x3b   :  { %v123_v16 = vpop.eup %122 }
  0x3c   :  { %v40_v18 = vmul.f32 0.6931472, %v123_v16 }
  0x3e   :  { %v46_v21 = vsel %vm45_vm0, %v43_v15, %v40_v18 }
  0x3f   :  { %v48_v22 = vsub.f32 %v46_v21, %v47_v17 }
  0x41   :  { %v50_v23 = vadd.f32 %v49_v20, %v48_v22 }
  0x43   :  { %v57_v24 = vsel %vm56_vm1, %v50_v23, 0.0 }
  0x44   :  { %v66_v25 = vsel %vm65_vm2, %v57_v24, 0.0 }
  0x45   :  { %67 = vadd.xlane.f32.xlu0 %v66_v25 }
  0x46   :  { %157 = shalt.err (!%p154_p12)
}
  0x47   :  { %s158_s25 = scalar_lea.hbm %s240_s2, 32 }
  0x48   :  { %p159_p13 = scmp.ne.s32.totalorder %s240_s2, %s158_s25  ;;  %p162_p0 = scmp.lt.u32.totalorder %s158_s25, %s240_s2 }
  0x4a   :  { %p164_p1 = pnand %p162_p0, %p159_p13 }
  0x4c   :  { %167 = shalt.err (!%p164_p1)
}
  0x4d   :  { %103 = dma.vmem_to_hbm [thread:$0]  %s101_s21, 32, %s240_s2, [#allocation4]  }
  0x4e   :  { %s168_s8 = scalar_lea.hbm %s239_s1, 16 }
  0x4f   :  { %p169_p2 = scmp.ne.s32.totalorder %s239_s1, %s168_s8  ;;  %p172_p3 = scmp.lt.u32.totalorder %s168_s8, %s239_s1 }
  0x51   :  { %p174_p4 = pnand %p172_p3, %p169_p2 }
  0xd2   :  { %v68_v29 = vpop.xlane.xlu0 %67 }
  0xd3   :  { %v69_v30 = vrot.slane %v68_v29, 4 }
  0xd5   :  { %v70_v31 = vadd.f32 %v69_v30, %v68_v29 }
  0xd7   :  { %v71_v32 = vrot.slane %v70_v31, 2 }
  0xd9   :  { %v72_v33 = vadd.f32 %v71_v32, %v70_v31 }
  0xdb   :  { %v73_v34 = vrot.slane %v72_v33, 1 }
  0xdd   :  { %v74_v35 = vadd.f32 %v73_v34, %v72_v33 }
  0xdf   :  { %114 = vpush %v74_v35 }
 0x110   :  { %s115_s4 = spop %114 }
 0x111   :  { %s76_s5 = smul.f32 0.125, %s115_s4 }
 0x113   :  { %79 = sst [smem:[#allocation6]] %s76_s5 }
 0x114   :  { %177 = shalt.err (!%p174_p4)
}
 0x115   :  { %s186_s12 = smov [#allocation6]  }
 0x116   :  { %93 = dma.smem_to_hbm %s186_s12, 16, %s239_s1, [#allocation5]  }
 0x117   :  { %180 = dma.done.wait [#allocation5], 16  }
 0x118   :  { %181 = vsyncadd [#allocation5], 4294967280 }
 0x119   :  { %182 = dma.done.wait [#allocation4], 32  }
 0x11a   :  { %183 = vsyncadd [#allocation4], 4294967264 }
 0x11b   :  { %110 = sfence }
 0x11c   :  { %111 = vsyncpa [#allocation3], 1 }
 0x11d   :  { %112 = vsyncpa [#allocation4], 1 }
 0x11e   :  { %113 = vsyncpa [#allocation5], 1 }

</bundles_post_ra>
